<compile_context>
chip_gen: v7x
topology: tpu7x:2x2x1
jax: 0.10.0
libtpu: 0.0.40
codegen_flags: <defaults>
</compile_context>

<pallas_src>
import jax
import jax.numpy as jnp
from jax.experimental import pallas as pl
from jax.experimental.pallas import tpu as pltpu

_SUBLANE = 8
_MAX_TB = 512          # batch-tile cap (rows per grid step)
_SPLIT_THRESHOLD = 256  # below this, one full-batch block (no pad/slice/grid)


def _round_up(n, m):
    return ((n + m - 1) // m) * m


def actor_kernel(x_ref, w1_ref, b1_ref, w2_ref, b2_ref, w3_ref, b3_ref, o_ref):
    # One batch tile per grid step; weights are resident (constant index_map).
    x = x_ref[...]

    # Layer 1: Linear(s_dim, 256) + ReLU
    h1 = jnp.dot(x, w1_ref[...], preferred_element_type=jnp.float32) + b1_ref[...]
    h1 = jnp.maximum(h1, 0.0)

    # Layer 2: Linear(256, 128) + ReLU
    h2 = jnp.dot(h1, w2_ref[...], preferred_element_type=jnp.float32) + b2_ref[...]
    h2 = jnp.maximum(h2, 0.0)

    # Layer 3: Linear(128, a_dim)
    logits = jnp.dot(h2, w3_ref[...], preferred_element_type=jnp.float32) + b3_ref[...]

    # Numerically stable softmax over the (unpadded) last axis.
    m = jnp.max(logits, axis=-1, keepdims=True)
    e = jnp.exp(logits - m)
    denom = jnp.sum(e, axis=-1, keepdims=True)
    o_ref[...] = (e * pl.reciprocal(denom, approx=False)).astype(o_ref.dtype)


def _choose_batch_tiling(B):
    """Return (tb, b_pad, n_steps).

    B < 256: a single block equal to the full batch (block == full array dim
    is always legal), so no padding and no output slicing are needed.
    B >= 256: >=2 grid steps (both v7x TensorCores get work), tiles capped at
    _MAX_TB rows, padding waste kept below one sublane-aligned half-batch.
    """
    if B < _SPLIT_THRESHOLD:
        return B, B, 1
    b8 = _round_up(B, _SUBLANE)
    tb = min(_MAX_TB, _round_up(pl.cdiv(b8, 2), _SUBLANE))
    b_pad = _round_up(b8, tb)
    return tb, b_pad, b_pad // tb


def actor_forward(x, params):
    """x: (B, s_dim) float32. params: dict of transposed weights/biases
    (w*: (in_features, out_features), b*: (1, out_features))."""
    w1, b1, w2, b2, w3, b3 = (params["w1"], params["b1"], params["w2"],
                              params["b2"], params["w3"], params["b3"])
    B, s_dim = x.shape
    h1_dim = w1.shape[1]          # 256
    h2_dim = w2.shape[1]          # 128
    a_dim = w3.shape[1]

    f32 = jnp.float32
    x = x.astype(f32)

    tb, b_pad, n_steps = _choose_batch_tiling(B)

    # Only pad the batch when it is actually split into tiles (large B).
    if b_pad != B:
        x_in = jnp.zeros((b_pad, s_dim), f32).at[:B, :].set(x)
    else:
        x_in = x

    out = pl.pallas_call(
        actor_kernel,
        out_shape=jax.ShapeDtypeStruct((b_pad, a_dim), f32),
        grid=(n_steps,),
        in_specs=[
            pl.BlockSpec((tb, s_dim), lambda i: (i, 0)),        # x tile per step
            pl.BlockSpec((s_dim, h1_dim), lambda i: (0, 0)),    # weights: resident
            pl.BlockSpec((1, h1_dim), lambda i: (0, 0)),
            pl.BlockSpec((h1_dim, h2_dim), lambda i: (0, 0)),
            pl.BlockSpec((1, h2_dim), lambda i: (0, 0)),
            pl.BlockSpec((h2_dim, a_dim), lambda i: (0, 0)),
            pl.BlockSpec((1, a_dim), lambda i: (0, 0)),
        ],
        out_specs=pl.BlockSpec((tb, a_dim), lambda i: (i, 0)),
        compiler_params=pltpu.CompilerParams(
            dimension_semantics=("parallel",),   # batch tiles split across TCs
            vmem_limit_bytes=16 << 20,           # covers the 512-row tile case
        ),
    )(x_in, w1, b1, w2, b2, w3, b3)

    if b_pad != B:
        out = out[:B]
    return out


def init_actor_params(key, s_dim, a_dim):
    """Deterministic init mimicking PyTorch nn.Linear default (uniform +/- 1/sqrt(fan_in)).
    Weights stored as (in_features, out_features); no padding needed by the kernel."""
    ks = jax.random.split(key, 6)

    def lin(kw, kb, fan_in, fan_out):
        bound = 1.0 / jnp.sqrt(jnp.float32(fan_in))
        w = jax.random.uniform(kw, (fan_in, fan_out), jnp.float32, -bound, bound)
        b = jax.random.uniform(kb, (1, fan_out), jnp.float32, -bound, bound)
        return w, b

    w1, b1 = lin(ks[0], ks[1], s_dim, 256)
    w2, b2 = lin(ks[2], ks[3], 256, 128)
    w3, b3 = lin(ks[4], ks[5], 128, a_dim)
    return dict(w1=w1, b1=b1, w2=w2, b2=b2, w3=w3, b3=b3)


if __name__ == "__main__":
    key = jax.random.PRNGKey(0)
    k_param, k_x = jax.random.split(key)

    B, S_DIM, A_DIM = 2, 8, 4  # small shapes consistent with Actor(s_dim=8, a_dim=4)
    params = init_actor_params(k_param, S_DIM, A_DIM)
    x = jax.random.normal(k_x, (B, S_DIM), jnp.float32)

    out = actor_forward(x, params)
    out = jax.block_until_ready(out)

    # Reference check in plain JAX (same math as the torch forward).
    h1 = jnp.maximum(x @ params["w1"] + params["b1"], 0.0)
    h2 = jnp.maximum(h1 @ params["w2"] + params["b2"], 0.0)
    logits = h2 @ params["w3"] + params["b3"]
    ref = jax.nn.softmax(logits, axis=-1)
    assert out.shape == (B, A_DIM)
    assert jnp.allclose(out, ref, atol=1e-5, rtol=1e-5)
    assert jnp.allclose(jnp.sum(out, axis=-1), 1.0, atol=1e-5)

    # Also exercise the multi-tile (B >= 256) path once to validate tiling.
    xb = jax.random.normal(jax.random.PRNGKey(1), (300, S_DIM), jnp.float32)
    outb = jax.block_until_ready(actor_forward(xb, params))
    h1b = jnp.maximum(xb @ params["w1"] + params["b1"], 0.0)
    h2b = jnp.maximum(h1b @ params["w2"] + params["b2"], 0.0)
    refb = jax.nn.softmax(h2b @ params["w3"] + params["b3"], axis=-1)
    assert outb.shape == (300, A_DIM)
    assert jnp.allclose(outb, refb, atol=1e-5, rtol=1e-5)

    print("KERNEL_OK")
</pallas_src>

<mosaic_0001>
module attributes {stable_mosaic.version = 11 : i64} {
  func.func @actor_kernel(%arg0: i32, %arg1: memref<2x8xf32, #tpu.memory_space<vmem>>, %arg2: memref<8x256xf32, #tpu.memory_space<vmem>>, %arg3: memref<1x256xf32, #tpu.memory_space<vmem>>, %arg4: memref<256x128xf32, #tpu.memory_space<vmem>>, %arg5: memref<1x128xf32, #tpu.memory_space<vmem>>, %arg6: memref<128x4xf32, #tpu.memory_space<vmem>>, %arg7: memref<1x4xf32, #tpu.memory_space<vmem>>, %arg8: memref<2x4xf32, #tpu.memory_space<vmem>>) attributes {dimension_semantics = [#tpu.dimension_semantics<parallel>], iteration_bounds = array<i64: 1>, scalar_prefetch = 0 : i64, scratch_operands = 0 : i64, tpu.core_type = #tpu.core_type<tc>, window_params = [{transform_indices = @transform_0, window_bounds = array<i64: 2, 8>}, {pipeline_mode = #tpu.pipeline_mode<synchronous>, transform_indices = @transform_1, window_bounds = array<i64: 8, 256>}, {pipeline_mode = #tpu.pipeline_mode<synchronous>, transform_indices = @transform_2, window_bounds = array<i64: 1, 256>}, {pipeline_mode = #tpu.pipeline_mode<synchronous>, transform_indices = @transform_3, window_bounds = array<i64: 256, 128>}, {pipeline_mode = #tpu.pipeline_mode<synchronous>, transform_indices = @transform_4, window_bounds = array<i64: 1, 128>}, {pipeline_mode = #tpu.pipeline_mode<synchronous>, transform_indices = @transform_5, window_bounds = array<i64: 128, 4>}, {pipeline_mode = #tpu.pipeline_mode<synchronous>, transform_indices = @transform_6, window_bounds = array<i64: 1, 4>}, {transform_indices = @transform_7, window_bounds = array<i64: 2, 4>}]} {
    %c0 = arith.constant 0 : index
    %c0_0 = arith.constant 0 : index
    %0 = vector.load %arg1[%c0, %c0_0] : memref<2x8xf32, #tpu.memory_space<vmem>>, vector<2x8xf32>
    %c0_1 = arith.constant 0 : index
    %c0_2 = arith.constant 0 : index
    %1 = vector.load %arg2[%c0_1, %c0_2] : memref<8x256xf32, #tpu.memory_space<vmem>>, vector<8x256xf32>
    %cst = arith.constant dense<0.000000e+00> : vector<2x256xf32>
    %2 = tpu.matmul %0, %1, %cst {dimension_numbers = #tpu.dot_dimension_numbers<[1], [0], [0], [1], [0, 0, 1, 1], [], []>} : vector<2x8xf32>, vector<8x256xf32>, vector<2x256xf32> -> vector<2x256xf32>
    %c0_3 = arith.constant 0 : index
    %c0_4 = arith.constant 0 : index
    %3 = vector.load %arg3[%c0_3, %c0_4] : memref<1x256xf32, #tpu.memory_space<vmem>>, vector<1x256xf32>
    %4 = vector.broadcast %3 : vector<1x256xf32> to vector<2x256xf32>
    %5 = arith.addf %2, %4 : vector<2x256xf32>
    %cst_5 = arith.constant 0.000000e+00 : f32
    %6 = vector.broadcast %cst_5 : f32 to vector<2x256xf32>
    %7 = arith.maximumf %5, %6 : vector<2x256xf32>
    %c0_6 = arith.constant 0 : index
    %c0_7 = arith.constant 0 : index
    %8 = vector.load %arg4[%c0_6, %c0_7] : memref<256x128xf32, #tpu.memory_space<vmem>>, vector<256x128xf32>
    %cst_8 = arith.constant dense<0.000000e+00> : vector<2x128xf32>
    %9 = tpu.matmul %7, %8, %cst_8 {dimension_numbers = #tpu.dot_dimension_numbers<[1], [0], [0], [1], [0, 0, 1, 1], [], []>} : vector<2x256xf32>, vector<256x128xf32>, vector<2x128xf32> -> vector<2x128xf32>
    %c0_9 = arith.constant 0 : index
    %c0_10 = arith.constant 0 : index
    %10 = vector.load %arg5[%c0_9, %c0_10] : memref<1x128xf32, #tpu.memory_space<vmem>>, vector<1x128xf32>
    %11 = vector.broadcast %10 : vector<1x128xf32> to vector<2x128xf32>
    %12 = arith.addf %9, %11 : vector<2x128xf32>
    %cst_11 = arith.constant 0.000000e+00 : f32
    %13 = vector.broadcast %cst_11 : f32 to vector<2x128xf32>
    %14 = arith.maximumf %12, %13 : vector<2x128xf32>
    %c0_12 = arith.constant 0 : index
    %c0_13 = arith.constant 0 : index
    %15 = vector.load %arg6[%c0_12, %c0_13] : memref<128x4xf32, #tpu.memory_space<vmem>>, vector<128x4xf32>
    %cst_14 = arith.constant dense<0.000000e+00> : vector<2x4xf32>
    %16 = tpu.matmul %14, %15, %cst_14 {dimension_numbers = #tpu.dot_dimension_numbers<[1], [0], [0], [1], [0, 0, 1, 1], [], []>} : vector<2x128xf32>, vector<128x4xf32>, vector<2x4xf32> -> vector<2x4xf32>
    %c0_15 = arith.constant 0 : index
    %c0_16 = arith.constant 0 : index
    %17 = vector.load %arg7[%c0_15, %c0_16] : memref<1x4xf32, #tpu.memory_space<vmem>>, vector<1x4xf32>
    %18 = vector.broadcast %17 : vector<1x4xf32> to vector<2x4xf32>
    %19 = arith.addf %16, %18 : vector<2x4xf32>
    %cst_17 = arith.constant dense<0xFF800000> : vector<2xf32>
    %20 = vector.multi_reduction <maximumf>, %19, %cst_17 [1] : vector<2x4xf32> to vector<2xf32>
    %21 = vector.shape_cast %20 : vector<2xf32> to vector<2x1xf32>
    %22 = vector.broadcast %21 : vector<2x1xf32> to vector<2x4xf32>
    %23 = arith.subf %19, %22 : vector<2x4xf32>
    %24 = math.exp %23 : vector<2x4xf32>
    %cst_18 = arith.constant dense<0.000000e+00> : vector<2xf32>
    %25 = vector.multi_reduction <add>, %24, %cst_18 [1] : vector<2x4xf32> to vector<2xf32>
    %26 = vector.shape_cast %25 : vector<2xf32> to vector<2x1xf32>
    %27 = tpu.reciprocal %26 : vector<2x1xf32> -> vector<2x1xf32>
    %28 = vector.broadcast %27 : vector<2x1xf32> to vector<2x4xf32>
    %29 = arith.mulf %24, %28 : vector<2x4xf32>
    %c0_19 = arith.constant 0 : index
    %c0_20 = arith.constant 0 : index
    %30 = vector.load %arg8[%c0_19, %c0_20] : memref<2x4xf32, #tpu.memory_space<vmem>>, vector<2x4xf32>
    tpu.vector_store %arg8[%c0_19, %c0_20], %29 {strides = array<i32>} : memref<2x4xf32, #tpu.memory_space<vmem>>, vector<2x4xf32>,
    return
  }
  func.func @transform_0(%arg0: i32) -> (i32, i32) {
    %c0_i32 = arith.constant 0 : i32
    %c0_i32_0 = arith.constant 0 : i32
    return %arg0, %c0_i32 : i32, i32
  }
  func.func @transform_1(%arg0: i32) -> (i32, i32) {
    %c0_i32 = arith.constant 0 : i32
    %c0_i32_0 = arith.constant 0 : i32
    %c0_i32_1 = arith.constant 0 : i32
    return %c0_i32, %c0_i32_0 : i32, i32
  }
  func.func @transform_2(%arg0: i32) -> (i32, i32) {
    %c0_i32 = arith.constant 0 : i32
    %c0_i32_0 = arith.constant 0 : i32
    %c0_i32_1 = arith.constant 0 : i32
    return %c0_i32, %c0_i32_0 : i32, i32
  }
  func.func @transform_3(%arg0: i32) -> (i32, i32) {
    %c0_i32 = arith.constant 0 : i32
    %c0_i32_0 = arith.constant 0 : i32
    %c0_i32_1 = arith.constant 0 : i32
    return %c0_i32, %c0_i32_0 : i32, i32
  }
  func.func @transform_4(%arg0: i32) -> (i32, i32) {
    %c0_i32 = arith.constant 0 : i32
    %c0_i32_0 = arith.constant 0 : i32
    %c0_i32_1 = arith.constant 0 : i32
    return %c0_i32, %c0_i32_0 : i32, i32
  }
  func.func @transform_5(%arg0: i32) -> (i32, i32) {
    %c0_i32 = arith.constant 0 : i32
    %c0_i32_0 = arith.constant 0 : i32
    %c0_i32_1 = arith.constant 0 : i32
    return %c0_i32, %c0_i32_0 : i32, i32
  }
  func.func @transform_6(%arg0: i32) -> (i32, i32) {
    %c0_i32 = arith.constant 0 : i32
    %c0_i32_0 = arith.constant 0 : i32
    %c0_i32_1 = arith.constant 0 : i32
    return %c0_i32, %c0_i32_0 : i32, i32
  }
  func.func @transform_7(%arg0: i32) -> (i32, i32) {
    %c0_i32 = arith.constant 0 : i32
    %c0_i32_0 = arith.constant 0 : i32
    return %arg0, %c0_i32 : i32, i32
  }
}

</mosaic_0001>

<bundles_post_ra>
// kernel: tpu_custom_call.1
= control target key start
LH: loop header
LB: loop body
LE: loop exit
PB: predicated region body
PF: predicated region fallthrough
CT: control target
= control target key end

     0   :  { %12 = vsyncpa [#allocation3], 0  ;;  %s711_s0 = inlined_call_operand.vmem [shape: f32[2,8], index: 0, kind: input, shape index: {}]   ;;  %s712_s1 = inlined_call_operand.vmem [shape: f32[8,256], index: 1, kind: input, shape index: {}]   ;;  %s713_s2 = inlined_call_operand.vmem [shape: f32[1,256], index: 2, kind: input, shape index: {}]   ;;  %s714_s3 = inlined_call_operand.hbm [shape: f32[256,128], index: 3, kind: input, shape index: {}]   ;;  %s715_s4 = inlined_call_operand.vmem [shape: f32[1,128], index: 4, kind: input, shape index: {}]   ;;  %s716_s5 = inlined_call_operand.vmem [shape: f32[128,4], index: 5, kind: input, shape index: {}]   ;;  %s717_s6 = inlined_call_operand.vmem [shape: f32[1,4], index: 6, kind: input, shape index: {}]   ;;  %s718_s7 = inlined_call_operand.hbm [shape: f32[2,4], index: 7, kind: output, shape index: {}]  }
   0x1   :  { %13 = vsyncpa [#allocation4], 0  ;;  %s569_s24 = smov [#allocation2]   ;;  %s521_s28 = scalar_lea.hbm %s714_s3, 4096 }
   0x2   :  { %s25_s25 = sshll.u32 %s569_s24, 4  ;;  %p522_p0 = scmp.ne.s32.totalorder %s714_s3, %s521_s28  ;;  %s26_s25 = int_to_ptr.vmem [resolvable:$true] %s25_s25 }
   0x3   :  { %p525_p1 = scmp.lt.u32.totalorder %s521_s28, %s714_s3 }
   0x5   :  { %p527_p2 = pnand %p525_p1, %p522_p0 }
   0x7   :  { %530 = shalt.err (!%p527_p2)
}
   0x8   :  { %s531_s10 = scalar_lea.vmem %s26_s25, 4096  ;;  %p536_p4 = scmp.lt.s32.totalorder %s26_s25, %s26_s25 }
   0x9   :  { %p532_p3 = scmp.ne.s32.totalorder %s26_s25, %s531_s10  ;;  %p537_p5 = scmp.lt.s32.totalorder %s531_s10, %s531_s10 }
   0xb   :  { %p538_p6 = por %p537_p5, %p536_p4 }
   0xd   :  { %p539_p7 = pnand %p538_p6, %p532_p3 }
   0xf   :  { %542 = shalt.err (!%p539_p7)
}
  0x10   :  { %s570_s11 = smov 128   ;;  %s571_s12 = smov 8  }
  0x11   :  { %31 = dma.hbm_to_vmem [thread:$0]  %s714_s3, 4096, %s26_s25, [#allocation3], %s570_s11, %s570_s11, %s571_s12  }
  0x12   :  { %565 = dma.done.wait [#allocation3], 4096  }
  0x13   :  { %566 = vsyncadd [#allocation3], 4294963200  ;;  %v572_v0 = vmov 0.0   ;;  %v43_v1 = vld [vmem:[%s712_s1 + $0x8] sm:$0xff]  ;;  %v42_v2 = vld [vmem:[%s712_s1] sm:$0xff]  ;;  %vm56_vm0 = vcmask 64512  }
  0x14   :  { %124 = vmatprep.mubr.f32.mxu0 %v572_v0  ;;  %v41_v3 = vld [vmem:[%s711_s0] sm:$0x3]  ;;  %60 = vmatprep.subr.mxu0 %v43_v1  ;;  %v150_v5 = vld [vmem:[#allocation2 + $0x88] sm:$0xff]  ;;  %v151_v9 = vld [vmem:[#allocation2 + $0x90] sm:$0xff]  ;;  %v573_v55 = vmov 0.0|0.0   ;;  %vm574_vm1 = vmmov 0  }
  0x15   :  { %v149_v4 = vld [vmem:[#allocation2 + $0x80] sm:$0xff]  ;;  %61 = vmatpush1.msra.mxu0 %v42_v2  ;;  %v134_v8 = vld [vmem:[#allocation2 + $0x8] sm:$0xff]  ;;  %v152_v10 = vld [vmem:[#allocation2 + $0x98] sm:$0xff]  ;;  %vm336_vm2 = vcmask 25600  }
  0x16   :  { %v133_v6 = vld [vmem:[#allocation2] sm:$0xff]  ;;  %v454_v7 = vpack.c.bf16 %v150_v5, %v149_v4  ;;  %364 = vmatmul.mubr.msk.f32.vlgmr.msra.gmra.mrb[0].mxu0 %vm56_vm0, %v41_v3  ;;  %v458_v12 = vpack.c.bf16 %v152_v10, %v151_v9  ;;  %v135_v13 = vld [vmem:[#allocation2 + $0x10] sm:$0xff]  ;;  %v136_v14 = vld [vmem:[#allocation2 + $0x18] sm:$0xff]  ;;  %486 = vmatprep.subr.bf16.mxu0 %v573_v55 }
  0x17   :  { %v456_v11 = vpack.c.bf16 %v134_v8, %v133_v6  ;;  %v153_v15 = vld [vmem:[#allocation2 + $0xa0] sm:$0xff]  ;;  %v154_v16 = vld [vmem:[#allocation2 + $0xa8] sm:$0xff]  ;;  %v460_v17 = vpack.c.bf16 %v136_v14, %v135_v13  ;;  %v155_v21 = vld [vmem:[#allocation2 + $0xb0] sm:$0xff]  ;;  %v46_v8 = vlaneseq  ;;  %451 = vmatprep.mubr.msk.f32.mxu0 %vm574_vm1, %v572_v0 }
  0x18   :  { %455 = vmatprep.subr.bf16.mxu1 %v454_v7  ;;  %v462_v18 = vpack.c.bf16 %v154_v16, %v153_v15  ;;  %v137_v19 = vld [vmem:[#allocation2 + $0x20] sm:$0xff]  ;;  %v138_v20 = vld [vmem:[#allocation2 + $0x28] sm:$0xff]  ;;  %v156_v22 = vld [vmem:[#allocation2 + $0xb8] sm:$0xff] }
  0x19   :  { %457 = vmatpush3.bf16.msra.mxu1 %v456_v11  ;;  %v464_v23 = vpack.c.bf16 %v138_v20, %v137_v19  ;;  %v466_v24 = vpack.c.bf16 %v156_v22, %v155_v21  ;;  %v139_v25 = vld [vmem:[#allocation2 + $0x30] sm:$0xff]  ;;  %v140_v26 = vld [vmem:[#allocation2 + $0x38] sm:$0xff]  ;;  %v157_v27 = vld [vmem:[#allocation2 + $0xc0] sm:$0xff]  ;;  %v47_v9 = vshrl.u32 %v46_v8, 7 }
  0x1a   :  { %459 = vmatprep.subr.bf16.mxu1 %v458_v12  ;;  %v158_v28 = vld [vmem:[#allocation2 + $0xc8] sm:$0xff]  ;;  %v468_v29 = vpack.c.bf16 %v140_v26, %v139_v25  ;;  %v141_v31 = vld [vmem:[#allocation2 + $0x40] sm:$0xff]  ;;  %v159_v33 = vld [vmem:[#allocation2 + $0xd0] sm:$0xff] }
  0x1b   :  { %v470_v30 = vpack.c.bf16 %v158_v28, %v157_v27  ;;  %v142_v32 = vld [vmem:[#allocation2 + $0x48] sm:$0xff]  ;;  %v160_v34 = vld [vmem:[#allocation2 + $0xd8] sm:$0xff]  ;;  %v143_v37 = vld [vmem:[#allocation2 + $0x50] sm:$0xff]  ;;  %v48_v10 = vsub.s32 0, %v47_v9  ;;  %v52_v12 = vsub.s32 1, %v47_v9 }
  0x1c   :  { %v472_v35 = vpack.c.bf16 %v142_v32, %v141_v31  ;;  %v474_v36 = vpack.c.bf16 %v160_v34, %v159_v33  ;;  %v144_v38 = vld [vmem:[#allocation2 + $0x58] sm:$0xff]  ;;  %v161_v39 = vld [vmem:[#allocation2 + $0xe0] sm:$0xff]  ;;  %v162_v40 = vld [vmem:[#allocation2 + $0xe8] sm:$0xff] }
  0x1d   :  { %461 = vmatpush3.bf16.msra.mxu1 %v460_v17  ;;  %v476_v41 = vpack.c.bf16 %v144_v38, %v143_v37  ;;  %v478_v42 = vpack.c.bf16 %v162_v40, %v161_v39  ;;  %v145_v43 = vld [vmem:[#allocation2 + $0x60] sm:$0xff]  ;;  %v146_v44 = vld [vmem:[#allocation2 + $0x68] sm:$0xff]  ;;  %v163_v46 = vld [vmem:[#allocation2 + $0xf0] sm:$0xff] }
  0x1e   :  { %463 = vmatprep.subr.bf16.mxu1 %v462_v18  ;;  %v480_v45 = vpack.c.bf16 %v146_v44, %v145_v43  ;;  %v164_v47 = vld [vmem:[#allocation2 + $0xf8] sm:$0xff]  ;;  %v147_v49 = vld [vmem:[#allocation2 + $0x70] sm:$0xff]  ;;  %v243_v52 = vld [vmem:[%s716_s5] sm:$0xff] }
  0x1f   :  { %v482_v48 = vpack.c.bf16 %v164_v47, %v163_v46  ;;  %v148_v50 = vld [vmem:[#allocation2 + $0x78] sm:$0xff]  ;;  %v244_v53 = vld [vmem:[%s716_s5 + $0x8] sm:$0xff]  ;;  %v245_v54 = vld [vmem:[%s716_s5 + $0x10] sm:$0xff] }
  0x20   :  { %v484_v51 = vpack.c.bf16 %v148_v50, %v147_v49  ;;  %v487_v56 = vpack.c.bf16 %v244_v53, %v243_v52  ;;  %v246_v57 = vld [vmem:[%s716_s5 + $0x18] sm:$0xff]  ;;  %v247_v59 = vld [vmem:[%s716_s5 + $0x20] sm:$0xff]  ;;  %v248_v60 = vld [vmem:[%s716_s5 + $0x28] sm:$0xff] }
  0x21   :  { %465 = vmatpush3.bf16.msra.mxu1 %v464_v23  ;;  %v490_v58 = vpack.c.bf16 %v246_v57, %v245_v54  ;;  %v493_v61 = vpack.c.bf16 %v248_v60, %v247_v59  ;;  %v249_v62 = vld [vmem:[%s716_s5 + $0x30] sm:$0xff]  ;;  %v250_v63 = vld [vmem:[%s716_s5 + $0x38] sm:$0xff]  ;;  %v251_v2 = vld [vmem:[%s716_s5 + $0x40] sm:$0xff] }
  0x22   :  { %467 = vmatprep.subr.bf16.mxu1 %v466_v24  ;;  %488 = vmatpush3.bf16.msra.mxu0 %v487_v56  ;;  %v496_v1 = vpack.c.bf16 %v250_v63, %v249_v62  ;;  %v252_v3 = vld [vmem:[%s716_s5 + $0x48] sm:$0xff]  ;;  %v253_v5 = vld [vmem:[%s716_s5 + $0x50] sm:$0xff]  ;;  %v254_v6 = vld [vmem:[%s716_s5 + $0x58] sm:$0xff] }
  0x23   :  { %489 = vmatprep.subr.bf16.mxu0 %v573_v55  ;;  %v499_v4 = vpack.c.bf16 %v252_v3, %v251_v2  ;;  %v502_v7 = vpack.c.bf16 %v254_v6, %v253_v5  ;;  %v44_v11 = vld [vmem:[%s713_s2] sm:$0x3]  ;;  %v256_v22 = vld [vmem:[%s716_s5 + $0x68] sm:$0xff]  ;;  %v257_v24 = vld [vmem:[%s716_s5 + $0x70] sm:$0xff] }
  0x24   :  { %v49_v13 = vrot.slane %v44_v11, %v48_v10  ;;  %v53_v14 = vrot.slane %v44_v11, %v52_v12  ;;  %v255_v21 = vld [vmem:[%s716_s5 + $0x60] sm:$0xff]  ;;  %v258_v25 = vld [vmem:[%s716_s5 + $0x78] sm:$0xff] }
  0x25   :  { %469 = vmatpush3.bf16.msra.mxu1 %v468_v29  ;;  %v505_v23 = vpack.c.bf16 %v256_v22, %v255_v21  ;;  %v508_v26 = vpack.c.bf16 %v258_v25, %v257_v24  ;;  %v365_v28 = vld [vmem:[%s715_s4] ss:$0 sm:$0xff]  ;;  %s575_s4 = smov [#allocation5]  }
  0x26   :  { %471 = vmatprep.subr.bf16.mxu1 %v470_v30  ;;  %491 = vmatpush3.bf16.msra.mxu0 %v490_v58  ;;  %v366_v33 = vld [vmem:[%s717_s6] ss:$0 sm:$0xff]  ;;  %s355_s5 = sshll.u32 %s575_s4, 4  ;;  %s356_s5 = int_to_ptr.vmem [resolvable:$true] %s355_s5 }
  0x27   :  { %492 = vmatprep.subr.bf16.mxu0 %v573_v55  ;;  %s543_s6 = scalar_lea.vmem %s356_s5, 32  ;;  %p548_p9 = scmp.lt.s32.totalorder %s356_s5, %s356_s5 }
  0x28   :  { %p544_p8 = scmp.ne.s32.totalorder %s356_s5, %s543_s6  ;;  %p549_p10 = scmp.lt.s32.totalorder %s543_s6, %s543_s6 }
  0x29   :  { %473 = vmatpush3.bf16.msra.mxu1 %v472_v35 }
  0x2a   :  { %475 = vmatprep.subr.bf16.mxu1 %v474_v36  ;;  %494 = vmatpush3.bf16.msra.mxu0 %v493_v61  ;;  %p550_p11 = por %p549_p10, %p548_p9 }
  0x2b   :  { %495 = vmatprep.subr.bf16.mxu0 %v573_v55 }
  0x2c   :  { %p551_p12 = pnand %p550_p11, %p544_p8 }
  0x2d   :  { %477 = vmatpush3.bf16.msra.mxu1 %v476_v41 }
  0x2e   :  { %479 = vmatprep.subr.bf16.mxu1 %v478_v42  ;;  %497 = vmatpush3.bf16.msra.mxu0 %v496_v1 }
  0x2f   :  { %498 = vmatprep.subr.bf16.mxu0 %v573_v55 }
  0x31   :  { %481 = vmatpush3.bf16.msra.mxu1 %v480_v45 }
  0x32   :  { %483 = vmatprep.subr.bf16.mxu1 %v482_v48  ;;  %500 = vmatpush3.bf16.msra.mxu0 %v499_v4 }
  0x33   :  { %501 = vmatprep.subr.bf16.mxu0 %v573_v55 }
  0x35   :  { %485 = vmatpush3.bf16.msra.mxu1 %v484_v51 }
  0x36   :  { %503 = vmatpush3.bf16.msra.mxu0 %v502_v7 }
  0x37   :  { %504 = vmatprep.subr.bf16.mxu0 %v573_v55 }
  0x3a   :  { %506 = vmatpush3.bf16.msra.mxu0 %v505_v23 }
  0x3b   :  { %507 = vmatprep.subr.bf16.mxu0 %v573_v55 }
  0x3e   :  { %509 = vmatpush3.bf16.msra.mxu0 %v508_v26 }
  0xe9   :  { %v126_v15 = vpop.f32.mrb[0].mxu0 }
  0xea   :  { %v127_v16 = vadd.f32 %v126_v15, %v49_v13  ;;  %v128_v17 = vpop.f32.mrb[1].mxu0 }
  0xeb   :  { %v129_v18 = vadd.f32 %v128_v17, %v53_v14 }
  0xec   :  { %v131_v20 = vmax.f32 %v127_v16, 0.0 }
  0xed   :  { %v132_v19 = vmax.f32 %v129_v18, 0.0 }
  0xef   :  { %236 = vmatprep.mubr.f32.mxu1 %v132_v19 }
  0xf0   :  { %237 = vmatmul.mubr.f32.vlgmr.msra.gmra.mrb[0].mxu1 %v131_v20 }
 0x1c3   :  { %v399_v27 = vpop.f32.mrb[0].mxu1 }
 0x1c4   :  { %v400_v29 = vpop.f32.mrb[1].mxu1 }
 0x1c5   :  { %v401_v30 = vadd.f32 %v400_v29, %v399_v27 }
 0x1c7   :  { %v239_v31 = vadd.f32 %v401_v30, %v365_v28 }
 0x1c9   :  { %v242_v32 = vmax.f32 %v239_v31, 0.0 }
 0x1cb   :  { %452 = vmatmul.mubr.f32.vlgmr.msra.gmra.mrb[2].mxu0 %v242_v32 }
 0x29e   :  { %v332_v34 = vpop.f32.mrb[2].mxu0 }
 0x29f   :  { %v333_v35 = vadd.f32 %v366_v33, %v332_v34  ;;  %v453_v36 = vpop.f32.mrb[3].mxu0 }
 0x2a1   :  { %v337_v0 = vsel %vm336_vm2, %v333_v35, -inf }
 0x2a2   :  { %338 = vmax.xlane.f32.xlu0 %v337_v0 }
 0x32f   :  { %v339_v37 = vpop.xlane.xlu0 %338 }
 0x330   :  { %v340_v38 = vsub.f32 %v333_v35, %v339_v37 }
 0x332   :  { %v341_v39 = vmul.f32 1.442695, %v340_v38 }
 0x334   :  { %517 = vpow2.f32 %v341_v39 }
 0x33e   :  { %v518_v40 = vpop.eup %517 }
 0x33f   :  { %v343_v41 = vsel %vm336_vm2, %v518_v40, 0.0 }
 0x340   :  { %344 = vadd.xlane.f32.xlu0 %v343_v41 }
 0x3cd   :  { %v345_v42 = vpop.xlane.xlu0 %344 }
 0x3ce   :  { %519 = vrcp.f32 %v345_v42 }
 0x3d8   :  { %v520_v43 = vpop.eup %519 }
 0x3d9   :  { %v347_v44 = vmul.f32 %v520_v43, %v518_v40 }
 0x3db   :  { %348 = vst.msk [vmem:[#allocation5] sm:$0x3] %vm336_vm2, %v347_v44 }
 0x3dc   :  { %554 = shalt.err (!%p551_p12)
}
 0x3dd   :  { %s555_s8 = scalar_lea.hbm %s718_s7, 32 }
 0x3de   :  { %p556_p13 = scmp.ne.s32.totalorder %s718_s7, %s555_s8  ;;  %p559_p0 = scmp.lt.u32.totalorder %s555_s8, %s718_s7 }
 0x3e0   :  { %p561_p1 = pnand %p559_p0, %p556_p13 }
 0x3e2   :  { %564 = shalt.err (!%p561_p1)
}
 0x3e3   :  { %358 = dma.vmem_to_hbm [thread:$0]  %s356_s5, 32, %s718_s7, [#allocation4]  }
 0x3e4   :  { %567 = dma.done.wait [#allocation4], 32  }
 0x3e5   :  { %568 = vsyncadd [#allocation4], 4294967264 }
 0x3e6   :  { %362 = vsyncpa [#allocation3], 1 }
 0x3e7   :  { %363 = vsyncpa [#allocation4], 1 }

</bundles_post_ra>
